<compile_context>
chip_gen: v7x
topology: tpu7x:2x2x1
jax: 0.10.0
libtpu: 0.0.40
codegen_flags: <defaults>
</compile_context>

<pallas_src>
import math

import jax
import jax.numpy as jnp
from jax.experimental import pallas as pl
from jax.experimental.pallas import tpu as pltpu


LANE = 128
SUBLANE = 8
H1, H2 = 512, 256
VMEM_BUDGET = 24 * 1024 * 1024   # headroom inside the 32 MiB scoped VMEM limit


def _round_up(n, m):
    return (n + m - 1) // m * m


def discriminator_kernel(x_ref, w1_ref, b1_ref, w2_ref, b2_ref, w3t_ref, b3_ref, o_ref):
    # x_ref: (tb, K) f32.  Cast to bf16 in-kernel (VPU has slack); MXU accumulates f32.
    x = x_ref[...].astype(jnp.bfloat16)

    h1 = jnp.dot(x, w1_ref[...], preferred_element_type=jnp.float32) + b1_ref[...]
    h1 = jnp.where(h1 > 0, h1, 0.2 * h1)

    h2 = jnp.dot(h1.astype(jnp.bfloat16), w2_ref[...],
                 preferred_element_type=jnp.float32) + b2_ref[...]
    h2 = jnp.where(h2 > 0, h2, 0.2 * h2)

    # Layer 3 (256 -> 1) computed directly in the lane-dense (1, tb) layout:
    # w3t rows (row 0 real, rows 1..7 zero pad) contracted against h2's feature
    # dim (q @ k^T style dot_general), putting the batch on lanes so the output
    # store is a dense (1, tb) row rather than a (tb, 128)-padded slab.
    h3 = jax.lax.dot_general(
        w3t_ref[...], h2.astype(jnp.bfloat16),
        dimension_numbers=(((1,), (1,)), ((), ())),
        preferred_element_type=jnp.float32)                 # (8, tb)
    o_ref[...] = jax.nn.sigmoid(h3[0:1, :] + b3_ref[...])   # (1, tb) f32


def pack_discriminator_params(params):
    """One-time packing: matmul weights -> bf16 (halves weight DMA bytes), biases
    stay f32, w3 stored transposed as an (8, 256) block (row 0 = real weights,
    rows 1..7 zero) so layer 3 emits a lane-dense (1, tb) row."""
    w3t = jnp.zeros((SUBLANE, H2), jnp.float32).at[0].set(params["w3"][:, 0])
    return dict(
        w1=params["w1"].astype(jnp.bfloat16),
        b1=params["b1"].astype(jnp.float32),
        w2=params["w2"].astype(jnp.bfloat16),
        b2=params["b2"].astype(jnp.float32),
        w3t=w3t.astype(jnp.bfloat16),
        b3=params["b3"].astype(jnp.float32),     # (1, 1)
    )


def _pick_batch_tile(B, K):
    """Largest tile (multiple of 8) that (a) fits the VMEM budget and (b) leaves
    at least 2 grid steps when the batch allows it (v7x megacore: both TCs work)."""
    # Per-row VMEM bytes: double-buffered f32 x rows + f32 h1/h2 + their bf16 copies.
    bytes_per_row = 2 * 4 * K + (4 + 2) * (H1 + H2)
    weight_bytes = 2 * 2 * (K * H1 + H1 * H2 + SUBLANE * H2)   # double-buffered bf16
    row_cap = max(SUBLANE,
                  ((VMEM_BUDGET - weight_bytes) // bytes_per_row) // SUBLANE * SUBLANE)
    for t in (2048, 1024, 512, 256, 128, 64, 32, 16, 8):
        if t <= row_cap and pl.cdiv(B, t) >= 2:
            return t
    return min(_round_up(B, SUBLANE), row_cap)   # tiny batch: single tile


def discriminator_forward(x, packed, *, batch_tile=None):
    """x: (B, input_size) float; packed: output of pack_discriminator_params."""
    B, K = x.shape
    w1, b1 = packed["w1"], packed["b1"]
    w2, b2 = packed["w2"], packed["b2"]
    w3t, b3 = packed["w3t"], packed["b3"]

    tb = _pick_batch_tile(B, K) if batch_tile is None else batch_tile
    assert tb % SUBLANE == 0, "batch_tile must be a multiple of 8"
    num_tiles = pl.cdiv(B, tb)
    b_pad = num_tiles * tb

    x = x.astype(jnp.float32)
    if b_pad != B:
        # Ragged batch: pad rows (full-width MXU passes, short grid) rather than
        # shrinking the tile; padded rows are sliced off below.
        x = jnp.pad(x, ((0, b_pad - B), (0, 0)))

    def rep(arr):  # whole weight/bias block, resident across all grid steps
        return pl.BlockSpec(arr.shape, lambda i: (0,) * arr.ndim)

    out = pl.pallas_call(
        discriminator_kernel,
        out_shape=jax.ShapeDtypeStruct((num_tiles, 1, tb), jnp.float32),
        grid_spec=pltpu.PrefetchScalarGridSpec(
            num_scalar_prefetch=0,
            grid=(num_tiles,),
            in_specs=[
                pl.BlockSpec((tb, K), lambda i: (i, 0)),   # raw f32 x tile (full K)
                rep(w1), rep(b1), rep(w2), rep(b2), rep(w3t), rep(b3),
            ],
            out_specs=pl.BlockSpec((None, 1, tb), lambda i: (i, 0, 0)),
        ),
        compiler_params=pltpu.CompilerParams(
            dimension_semantics=("parallel",),   # independent batch tiles -> megacore
            vmem_limit_bytes=32 * 1024 * 1024,
        ),
    )(x, w1, b1, w2, b2, w3t, b3)

    out = out.reshape(b_pad, 1)
    return out if b_pad == B else out[:B]


def init_discriminator_params(key, input_size):
    """nn.Linear-style init: U(-1/sqrt(fan_in), 1/sqrt(fan_in)).
    Weights stored (in_features, out_features); biases (1, out_features)."""
    dims = [(input_size, H1), (H1, H2), (H2, 1)]
    params = {}
    for idx, (fan_in, fan_out) in enumerate(dims, start=1):
        key, kw, kb = jax.random.split(key, 3)
        bound = 1.0 / math.sqrt(fan_in)
        params[f"w{idx}"] = jax.random.uniform(
            kw, (fan_in, fan_out), jnp.float32, minval=-bound, maxval=bound)
        params[f"b{idx}"] = jax.random.uniform(
            kb, (1, fan_out), jnp.float32, minval=-bound, maxval=bound)
    return params


def discriminator_reference_f32(x, params):
    """Pure-f32 reference matching the PyTorch module exactly."""
    h = jnp.dot(x, params["w1"]) + params["b1"]
    h = jnp.where(h > 0, h, 0.2 * h)
    h = jnp.dot(h, params["w2"]) + params["b2"]
    h = jnp.where(h > 0, h, 0.2 * h)
    h = jnp.dot(h, params["w3"]) + params["b3"]
    return jax.nn.sigmoid(h)


def discriminator_reference_bf16(x, packed):
    """Reference with the same bf16-operand / f32-accumulate precision as the kernel."""
    w3 = packed["w3t"][0:1, :].T   # (256, 1) bf16
    h = jnp.dot(x.astype(jnp.bfloat16), packed["w1"],
                preferred_element_type=jnp.float32) + packed["b1"]
    h = jnp.where(h > 0, h, 0.2 * h)
    h = jnp.dot(h.astype(jnp.bfloat16), packed["w2"],
                preferred_element_type=jnp.float32) + packed["b2"]
    h = jnp.where(h > 0, h, 0.2 * h)
    h = jnp.dot(h.astype(jnp.bfloat16), w3,
                preferred_element_type=jnp.float32) + packed["b3"]
    return jax.nn.sigmoid(h)


if __name__ == "__main__":
    key = jax.random.PRNGKey(0)
    key_x1, key_x2, key_x3, key_p = jax.random.split(key, 4)

    input_size = 64  # small "flattened image" feature size
    params = init_discriminator_params(key_p, input_size)
    packed = pack_discriminator_params(params)

    # Case 1: small batch, single grid step.
    x1 = jax.random.normal(key_x1, (8, input_size), dtype=jnp.float32)
    out1 = jax.block_until_ready(discriminator_forward(x1, packed))
    assert out1.shape == (8, 1)
    assert jnp.allclose(out1, discriminator_reference_bf16(x1, packed),
                        atol=1e-4, rtol=1e-4), "mismatch vs bf16-matched ref"
    assert jnp.allclose(out1, discriminator_reference_f32(x1, params),
                        atol=1e-2, rtol=1e-2), "mismatch vs f32 reference"

    # Case 2: ragged batch -> zero-padded to a tile multiple, 2-step grid.
    x2 = jax.random.normal(key_x2, (20, input_size), dtype=jnp.float32)
    out2 = jax.block_until_ready(discriminator_forward(x2, packed))
    assert out2.shape == (20, 1)
    assert jnp.allclose(out2, discriminator_reference_bf16(x2, packed),
                        atol=1e-4, rtol=1e-4), "ragged/tiled path mismatch"

    # Case 3: explicit tile -> 4-step grid.
    x3 = jax.random.normal(key_x3, (64, input_size), dtype=jnp.float32)
    out3 = jax.block_until_ready(discriminator_forward(x3, packed, batch_tile=16))
    assert out3.shape == (64, 1)
    assert jnp.allclose(out3, discriminator_reference_bf16(x3, packed),
                        atol=1e-4, rtol=1e-4), "explicit-tile path mismatch"

    print("KERNEL_OK")
</pallas_src>

<mosaic_0001>
module attributes {stable_mosaic.version = 11 : i64} {
  func.func @discriminator_kernel(%arg0: i32, %arg1: memref<8x64xf32, #tpu.memory_space<vmem>>, %arg2: memref<64x512xbf16, #tpu.memory_space<vmem>>, %arg3: memref<1x512xf32, #tpu.memory_space<vmem>>, %arg4: memref<512x256xbf16, #tpu.memory_space<vmem>>, %arg5: memref<1x256xf32, #tpu.memory_space<vmem>>, %arg6: memref<8x256xbf16, #tpu.memory_space<vmem>>, %arg7: memref<1x1xf32, #tpu.memory_space<vmem>>, %arg8: memref<1x1x8xf32, #tpu.memory_space<vmem>>) attributes {dimension_semantics = [#tpu.dimension_semantics<parallel>], iteration_bounds = array<i64: 1>, scalar_prefetch = 0 : i64, scratch_operands = 0 : i64, tpu.core_type = #tpu.core_type<tc>, window_params = [{transform_indices = @transform_0, window_bounds = array<i64: 8, 64>}, {pipeline_mode = #tpu.pipeline_mode<synchronous>, transform_indices = @transform_1, window_bounds = array<i64: 64, 512>}, {pipeline_mode = #tpu.pipeline_mode<synchronous>, transform_indices = @transform_2, window_bounds = array<i64: 1, 512>}, {pipeline_mode = #tpu.pipeline_mode<synchronous>, transform_indices = @transform_3, window_bounds = array<i64: 512, 256>}, {pipeline_mode = #tpu.pipeline_mode<synchronous>, transform_indices = @transform_4, window_bounds = array<i64: 1, 256>}, {pipeline_mode = #tpu.pipeline_mode<synchronous>, transform_indices = @transform_5, window_bounds = array<i64: 8, 256>}, {pipeline_mode = #tpu.pipeline_mode<synchronous>, transform_indices = @transform_6, window_bounds = array<i64: 1, 1>}, {transform_indices = @transform_7, window_bounds = array<i64: 1, 1, 8>}]} {
    %c0 = arith.constant 0 : index
    %c0_0 = arith.constant 0 : index
    %0 = vector.load %arg1[%c0, %c0_0] : memref<8x64xf32, #tpu.memory_space<vmem>>, vector<8x64xf32>
    %1 = arith.truncf %0 : vector<8x64xf32> to vector<8x64xbf16>
    %c0_1 = arith.constant 0 : index
    %c0_2 = arith.constant 0 : index
    %2 = vector.load %arg2[%c0_1, %c0_2] : memref<64x512xbf16, #tpu.memory_space<vmem>>, vector<64x512xbf16>
    %cst = arith.constant dense<0.000000e+00> : vector<8x512xf32>
    %3 = tpu.matmul %1, %2, %cst {dimension_numbers = #tpu.dot_dimension_numbers<[1], [0], [0], [1], [0, 0, 1, 1], [], []>} : vector<8x64xbf16>, vector<64x512xbf16>, vector<8x512xf32> -> vector<8x512xf32>
    %c0_3 = arith.constant 0 : index
    %c0_4 = arith.constant 0 : index
    %4 = vector.load %arg3[%c0_3, %c0_4] : memref<1x512xf32, #tpu.memory_space<vmem>>, vector<1x512xf32>
    %5 = vector.broadcast %4 : vector<1x512xf32> to vector<8x512xf32>
    %6 = arith.addf %3, %5 : vector<8x512xf32>
    %cst_5 = arith.constant 0.000000e+00 : f32
    %7 = vector.broadcast %cst_5 : f32 to vector<8x512xf32>
    %8 = arith.cmpf ogt, %6, %7 : vector<8x512xf32>
    %cst_6 = arith.constant 2.000000e-01 : f32
    %9 = vector.broadcast %cst_6 : f32 to vector<8x512xf32>
    %10 = arith.mulf %9, %6 : vector<8x512xf32>
    %11 = arith.select %8, %6, %10 : vector<8x512xi1>, vector<8x512xf32>
    %12 = arith.truncf %11 : vector<8x512xf32> to vector<8x512xbf16>
    %c0_7 = arith.constant 0 : index
    %c0_8 = arith.constant 0 : index
    %13 = vector.load %arg4[%c0_7, %c0_8] : memref<512x256xbf16, #tpu.memory_space<vmem>>, vector<512x256xbf16>
    %cst_9 = arith.constant dense<0.000000e+00> : vector<8x256xf32>
    %14 = tpu.matmul %12, %13, %cst_9 {dimension_numbers = #tpu.dot_dimension_numbers<[1], [0], [0], [1], [0, 0, 1, 1], [], []>} : vector<8x512xbf16>, vector<512x256xbf16>, vector<8x256xf32> -> vector<8x256xf32>
    %c0_10 = arith.constant 0 : index
    %c0_11 = arith.constant 0 : index
    %15 = vector.load %arg5[%c0_10, %c0_11] : memref<1x256xf32, #tpu.memory_space<vmem>>, vector<1x256xf32>
    %16 = vector.broadcast %15 : vector<1x256xf32> to vector<8x256xf32>
    %17 = arith.addf %14, %16 : vector<8x256xf32>
    %cst_12 = arith.constant 0.000000e+00 : f32
    %18 = vector.broadcast %cst_12 : f32 to vector<8x256xf32>
    %19 = arith.cmpf ogt, %17, %18 : vector<8x256xf32>
    %cst_13 = arith.constant 2.000000e-01 : f32
    %20 = vector.broadcast %cst_13 : f32 to vector<8x256xf32>
    %21 = arith.mulf %20, %17 : vector<8x256xf32>
    %22 = arith.select %19, %17, %21 : vector<8x256xi1>, vector<8x256xf32>
    %c0_14 = arith.constant 0 : index
    %c0_15 = arith.constant 0 : index
    %23 = vector.load %arg6[%c0_14, %c0_15] : memref<8x256xbf16, #tpu.memory_space<vmem>>, vector<8x256xbf16>
    %24 = arith.truncf %22 : vector<8x256xf32> to vector<8x256xbf16>
    %cst_16 = arith.constant dense<0.000000e+00> : vector<8x8xf32>
    %25 = tpu.matmul %23, %24, %cst_16 {dimension_numbers = #tpu.dot_dimension_numbers<[1], [1], [0], [0], [0, 0, 1, 0], [], []>} : vector<8x256xbf16>, vector<8x256xbf16>, vector<8x8xf32> -> vector<8x8xf32>
    %26 = vector.extract_strided_slice %25 {offsets = [0, 0], sizes = [1, 8], strides = [1, 1]} : vector<8x8xf32> to vector<1x8xf32>
    %c0_17 = arith.constant 0 : index
    %c0_18 = arith.constant 0 : index
    %27 = vector.load %arg7[%c0_17, %c0_18] : memref<1x1xf32, #tpu.memory_space<vmem>>, vector<1x1xf32>
    %28 = vector.broadcast %27 : vector<1x1xf32> to vector<1x8xf32>
    %29 = arith.addf %26, %28 : vector<1x8xf32>
    %30 = arith.negf %29 : vector<1x8xf32>
    %31 = math.exp %30 : vector<1x8xf32>
    %cst_19 = arith.constant 1.000000e+00 : f32
    %32 = vector.broadcast %cst_19 : f32 to vector<1x8xf32>
    %33 = arith.addf %32, %31 : vector<1x8xf32>
    %34 = arith.divf %32, %33 : vector<1x8xf32>
    %c0_20 = arith.constant 0 : index
    %c0_21 = arith.constant 0 : index
    %c0_22 = arith.constant 0 : index
    %35 = vector.load %arg8[%c0_20, %c0_21, %c0_22] : memref<1x1x8xf32, #tpu.memory_space<vmem>>, vector<1x1x8xf32>
    %36 = vector.shape_cast %35 : vector<1x1x8xf32> to vector<1x8xf32>
    %37 = vector.shape_cast %34 : vector<1x8xf32> to vector<1x1x8xf32>
    tpu.vector_store %arg8[%c0_20, %c0_21, %c0_22], %37 {strides = array<i32>} : memref<1x1x8xf32, #tpu.memory_space<vmem>>, vector<1x1x8xf32>,
    return
  }
  func.func @transform_0(%arg0: i32) -> (i32, i32) {
    %c0_i32 = arith.constant 0 : i32
    %c0_i32_0 = arith.constant 0 : i32
    return %arg0, %c0_i32 : i32, i32
  }
  func.func @transform_1(%arg0: i32) -> (i32, i32) {
    %c0_i32 = arith.constant 0 : i32
    %c0_i32_0 = arith.constant 0 : i32
    %c0_i32_1 = arith.constant 0 : i32
    return %c0_i32, %c0_i32_0 : i32, i32
  }
  func.func @transform_2(%arg0: i32) -> (i32, i32) {
    %c0_i32 = arith.constant 0 : i32
    %c0_i32_0 = arith.constant 0 : i32
    %c0_i32_1 = arith.constant 0 : i32
    return %c0_i32, %c0_i32_0 : i32, i32
  }
  func.func @transform_3(%arg0: i32) -> (i32, i32) {
    %c0_i32 = arith.constant 0 : i32
    %c0_i32_0 = arith.constant 0 : i32
    %c0_i32_1 = arith.constant 0 : i32
    return %c0_i32, %c0_i32_0 : i32, i32
  }
  func.func @transform_4(%arg0: i32) -> (i32, i32) {
    %c0_i32 = arith.constant 0 : i32
    %c0_i32_0 = arith.constant 0 : i32
    %c0_i32_1 = arith.constant 0 : i32
    return %c0_i32, %c0_i32_0 : i32, i32
  }
  func.func @transform_5(%arg0: i32) -> (i32, i32) {
    %c0_i32 = arith.constant 0 : i32
    %c0_i32_0 = arith.constant 0 : i32
    %c0_i32_1 = arith.constant 0 : i32
    return %c0_i32, %c0_i32_0 : i32, i32
  }
  func.func @transform_6(%arg0: i32) -> (i32, i32) {
    %c0_i32 = arith.constant 0 : i32
    %c0_i32_0 = arith.constant 0 : i32
    %c0_i32_1 = arith.constant 0 : i32
    return %c0_i32, %c0_i32_0 : i32, i32
  }
  func.func @transform_7(%arg0: i32) -> (i32, i32, i32) {
    %c0_i32 = arith.constant 0 : i32
    %c0_i32_0 = arith.constant 0 : i32
    %c0_i32_1 = arith.constant 0 : i32
    return %arg0, %c0_i32, %c0_i32_0 : i32, i32, i32
  }
}

</mosaic_0001>

<bundles_post_ra>
// kernel: tpu_custom_call.1
= control target key start
LH: loop header
LB: loop body
LE: loop exit
PB: predicated region body
PF: predicated region fallthrough
CT: control target
= control target key end

     0   :  { %s1293_s0 = inlined_call_operand.hbm [shape: f32[8,64], index: 0, kind: input, shape index: {}]   ;;  %s1294_s1 = inlined_call_operand.hbm [shape: bf16[64,512], index: 1, kind: input, shape index: {}]   ;;  %s1295_s2 = inlined_call_operand.vmem [shape: f32[1,512], index: 2, kind: input, shape index: {}]   ;;  %s1296_s3 = inlined_call_operand.hbm [shape: bf16[512,256], index: 3, kind: input, shape index: {}]   ;;  %s1297_s4 = inlined_call_operand.vmem [shape: f32[1,256], index: 4, kind: input, shape index: {}]   ;;  %s1298_s5 = inlined_call_operand.vmem [shape: bf16[8,256], index: 5, kind: input, shape index: {}]   ;;  %s1299_s6 = inlined_call_operand.<no memory space> [shape: f32[1,1], index: 6, kind: input, shape index: {}]   ;;  %s1300_s7 = inlined_call_operand.hbm [shape: f32[1,1,8], index: 7, kind: output, shape index: {}]  }
   0x1   :  { %v12_v0 = vstv %s1299_s6 }
   0x2   :  { %13 = vst [vmem:[#allocation2] sm:$0x1] %v12_v0 }
   0x3   :  { %14 = vsyncpa [#allocation4], 0 }
   0x4   :  { %15 = vsyncpa [#allocation7], 0 }
   0x5   :  { %16 = vsyncpa [#allocation5], 0  ;;  %s1179_s26 = smov [#allocation6]   ;;  %s1085_s30 = scalar_lea.hbm %s1294_s1, 2048 }
   0x6   :  { %s32_s27 = sshll.u32 %s1179_s26, 4  ;;  %p1086_p0 = scmp.ne.s32.totalorder %s1294_s1, %s1085_s30  ;;  %s33_s27 = int_to_ptr.vmem [resolvable:$true] %s32_s27 }
   0x7   :  { %p1089_p1 = scmp.lt.u32.totalorder %s1085_s30, %s1294_s1 }
   0x9   :  { %p1091_p2 = pnand %p1089_p1, %p1086_p0 }
   0xb   :  { %1094 = shalt.err (!%p1091_p2)
}
   0xc   :  { %s1095_s6 = scalar_lea.vmem %s33_s27, 2048  ;;  %p1100_p4 = scmp.lt.s32.totalorder %s33_s27, %s33_s27 }
   0xd   :  { %p1096_p3 = scmp.ne.s32.totalorder %s33_s27, %s1095_s6  ;;  %p1101_p5 = scmp.lt.s32.totalorder %s1095_s6, %s1095_s6 }
   0xf   :  { %p1102_p6 = por %p1101_p5, %p1100_p4 }
  0x11   :  { %p1103_p7 = pnand %p1102_p6, %p1096_p3 }
  0x13   :  { %1106 = shalt.err (!%p1103_p7)
}
  0x14   :  { %s1180_s12 = smov 256   ;;  %s1181_s13 = smov 16  }
  0x15   :  { %38 = dma.hbm_to_vmem [thread:$0]  %s1294_s1, 2048, %s33_s27, [#allocation7], %s1180_s12, %s1180_s12, %s1181_s13  }
  0x16   :  { %s1182_s16 = smov [#allocation3]   ;;  %s1183_s18 = smov [#allocation8]  }
  0x17   :  { %s23_s17 = sshll.u32 %s1182_s16, 4  ;;  %s46_s19 = sshll.u32 %s1183_s18, 4  ;;  %s24_s17 = int_to_ptr.vmem [resolvable:$true] %s23_s17  ;;  %s47_s19 = int_to_ptr.vmem [resolvable:$true] %s46_s19 }
  0x18   :  { %s1107_s22 = scalar_lea.hbm %s1293_s0, 128 }
  0x19   :  { %p1108_p8 = scmp.ne.s32.totalorder %s1293_s0, %s1107_s22  ;;  %p1111_p9 = scmp.lt.u32.totalorder %s1107_s22, %s1293_s0 }
  0x1b   :  { %p1113_p10 = pnand %p1111_p9, %p1108_p8 }
  0x1d   :  { %1116 = shalt.err (!%p1113_p10)
}
  0x1e   :  { %s1117_s1 = scalar_lea.vmem %s24_s17, 128  ;;  %p1122_p12 = scmp.lt.s32.totalorder %s24_s17, %s24_s17 }
  0x1f   :  { %p1118_p11 = scmp.ne.s32.totalorder %s24_s17, %s1117_s1  ;;  %p1123_p13 = scmp.lt.s32.totalorder %s1117_s1, %s1117_s1 }
  0x21   :  { %p1124_p0 = por %p1123_p13, %p1122_p12 }
  0x23   :  { %p1125_p1 = pnand %p1124_p0, %p1118_p11 }
  0x25   :  { %1128 = shalt.err (!%p1125_p1)
}
  0x26   :  { %26 = dma.hbm_to_vmem [thread:$0]  %s1293_s0, 128, %s24_s17, [#allocation4]  }
  0x27   :  { %s1129_s8 = scalar_lea.hbm %s1296_s3, 8192 }
  0x28   :  { %p1130_p2 = scmp.ne.s32.totalorder %s1296_s3, %s1129_s8  ;;  %p1133_p3 = scmp.lt.u32.totalorder %s1129_s8, %s1296_s3 }
  0x2a   :  { %p1135_p4 = pnand %p1133_p3, %p1130_p2 }
  0x2c   :  { %1138 = shalt.err (!%p1135_p4)
}
  0x2d   :  { %s1139_s12 = scalar_lea.vmem %s47_s19, 8192  ;;  %p1144_p6 = scmp.lt.s32.totalorder %s47_s19, %s47_s19 }
  0x2e   :  { %p1140_p5 = scmp.ne.s32.totalorder %s47_s19, %s1139_s12  ;;  %p1145_p7 = scmp.lt.s32.totalorder %s1139_s12, %s1139_s12 }
  0x30   :  { %p1146_p8 = por %p1145_p7, %p1144_p6 }
  0x32   :  { %p1147_p9 = pnand %p1146_p8, %p1140_p5 }
  0x34   :  { %1150 = shalt.err (!%p1147_p9)
}
  0x35   :  { %s1184_s0 = smov 128   ;;  %s1185_s13 = smov 8  }
  0x36   :  { %52 = dma.hbm_to_vmem [thread:$0]  %s1296_s3, 8192, %s47_s19, [#allocation7], %s1184_s0, %s1184_s0, %s1185_s13  }
  0x37   :  { %1173 = dma.done.wait [#allocation4], 128  }
  0x38   :  { %1174 = vsyncadd [#allocation4], 4294967168 }
  0x39   :  { %1175 = dma.done.wait [#allocation7], 10240  }
  0x3a   :  { %1176 = vsyncadd [#allocation7], 4294957056  ;;  %v1186_v1 = vmov 0   ;;  %v959_v2 = vld [vmem:[#allocation6 + $0x4] ss:$16 sps:$4 sm:$0xff]   ;;  %v69_v18 = vld [vmem:[#allocation3] sm:$0xff] }
  0x3b   :  { %225 = vmatprep.mubr.bf16.mxu0 %v1186_v1  ;;  %266 = vmatprep.mubr.bf16.mxu1 %v1186_v1  ;;  %v961_v3 = vld [vmem:[#allocation6 + $0xc] ss:$16 sps:$4 sm:$0xff]   ;;  %v963_v4 = vld [vmem:[#allocation6] ss:$16 sps:$4 sm:$0xff]   ;;  %v964_v5 = vld [vmem:[#allocation6 + $0x8] ss:$16 sps:$4 sm:$0xff]   ;;  %v70_v21 = vpack.c.bf16 %v69_v18, %v69_v18 }
  0x3c   :  { %958 = vset.pattern.permute.xlu0 %v1186_v1  ;;  %193 = vmatprep.subr.bf16.mxu0 %v959_v2  ;;  %v965_v6 = vld [vmem:[#allocation6 + $0x24] ss:$16 sps:$4 sm:$0xff]   ;;  %v967_v7 = vld [vmem:[#allocation6 + $0x2c] ss:$16 sps:$4 sm:$0xff]   ;;  %v969_v8 = vld [vmem:[#allocation6 + $0x20] ss:$16 sps:$4 sm:$0xff]  }
  0x3d   :  { %234 = vmatprep.subr.bf16.mxu1 %v961_v3  ;;  %194 = vmatpush1.bf16.msra.mxu0 %v963_v4  ;;  %v970_v9 = vld [vmem:[#allocation6 + $0x28] ss:$16 sps:$4 sm:$0xff]   ;;  %v971_v10 = vld [vmem:[#allocation6 + $0x44] ss:$16 sps:$4 sm:$0xff]   ;;  %v973_v11 = vld [vmem:[#allocation6 + $0x4c] ss:$16 sps:$4 sm:$0xff]  }
  0x3e   :  { %235 = vmatpush1.bf16.msra.mxu1 %v964_v5  ;;  %195 = vmatprep.subr.bf16.mxu0 %v965_v6  ;;  %v975_v12 = vld [vmem:[#allocation6 + $0x40] ss:$16 sps:$4 sm:$0xff]   ;;  %v976_v13 = vld [vmem:[#allocation6 + $0x48] ss:$16 sps:$4 sm:$0xff]   ;;  %v977_v14 = vld [vmem:[#allocation6 + $0x64] ss:$16 sps:$4 sm:$0xff]  }
  0x3f   :  { %236 = vmatprep.subr.bf16.mxu1 %v967_v7  ;;  %v979_v15 = vld [vmem:[#allocation6 + $0x6c] ss:$16 sps:$4 sm:$0xff]   ;;  %v981_v16 = vld [vmem:[#allocation6 + $0x60] ss:$16 sps:$4 sm:$0xff]   ;;  %v982_v17 = vld [vmem:[#allocation6 + $0x68] ss:$16 sps:$4 sm:$0xff]  }
  0x40   :  { %v985_v19 = vld [vmem:[#allocation8 + $0x4] ss:$8 sps:$4 sm:$0xff]   ;;  %v983_v22 = vld [vmem:[#allocation8] ss:$8 sps:$4 sm:$0xff]   ;;  %vm189_vm0 = vcmask 523264   ;;  %vm842_vm7 = vcmask 57344  }
  0x41   :  { %196 = vmatpush1.bf16.msra.mxu0 %v969_v8  ;;  %v988_v20 = vld [vmem:[#allocation8 + $0x104] ss:$8 sps:$4 sm:$0xff]   ;;  %v986_v23 = vld [vmem:[#allocation8 + $0x100] ss:$8 sps:$4 sm:$0xff]   ;;  %v991_v24 = vld [vmem:[#allocation8 + $0x14] ss:$8 sps:$4 sm:$0xff]  }
  0x42   :  { %237 = vmatpush1.bf16.msra.mxu1 %v970_v9  ;;  %197 = vmatprep.subr.bf16.mxu0 %v971_v10  ;;  %v994_v25 = vld [vmem:[#allocation8 + $0x114] ss:$8 sps:$4 sm:$0xff]   ;;  %v989_v26 = vld [vmem:[#allocation8 + $0x10] ss:$8 sps:$4 sm:$0xff]   ;;  %v997_v28 = vld [vmem:[#allocation8 + $0x24] ss:$8 sps:$4 sm:$0xff]  }
  0x43   :  { %238 = vmatprep.subr.bf16.mxu1 %v973_v11  ;;  %v992_v27 = vld [vmem:[#allocation8 + $0x110] ss:$8 sps:$4 sm:$0xff]   ;;  %v1000_v29 = vld [vmem:[#allocation8 + $0x124] ss:$8 sps:$4 sm:$0xff]   ;;  %v995_v30 = vld [vmem:[#allocation8 + $0x20] ss:$8 sps:$4 sm:$0xff]  }
  0x44   :  { %v998_v31 = vld [vmem:[#allocation8 + $0x120] ss:$8 sps:$4 sm:$0xff]   ;;  %v1003_v32 = vld [vmem:[#allocation8 + $0x34] ss:$8 sps:$4 sm:$0xff]   ;;  %v1001_v34 = vld [vmem:[#allocation8 + $0x30] ss:$8 sps:$4 sm:$0xff]  }
  0x45   :  { %198 = vmatpush1.bf16.msra.mxu0 %v975_v12  ;;  %v1006_v33 = vld [vmem:[#allocation8 + $0x134] ss:$8 sps:$4 sm:$0xff]   ;;  %v1004_v35 = vld [vmem:[#allocation8 + $0x130] ss:$8 sps:$4 sm:$0xff]   ;;  %v1009_v36 = vld [vmem:[#allocation8 + $0x44] ss:$8 sps:$4 sm:$0xff]  }
  0x46   :  { %239 = vmatpush1.bf16.msra.mxu1 %v976_v13  ;;  %199 = vmatprep.subr.bf16.mxu0 %v977_v14  ;;  %v1012_v37 = vld [vmem:[#allocation8 + $0x144] ss:$8 sps:$4 sm:$0xff]   ;;  %v1007_v38 = vld [vmem:[#allocation8 + $0x40] ss:$8 sps:$4 sm:$0xff]   ;;  %v1015_v40 = vld [vmem:[#allocation8 + $0x54] ss:$8 sps:$4 sm:$0xff]  }
  0x47   :  { %240 = vmatprep.subr.bf16.mxu1 %v979_v15  ;;  %v1010_v39 = vld [vmem:[#allocation8 + $0x140] ss:$8 sps:$4 sm:$0xff]   ;;  %v1018_v41 = vld [vmem:[#allocation8 + $0x154] ss:$8 sps:$4 sm:$0xff]   ;;  %v1013_v42 = vld [vmem:[#allocation8 + $0x50] ss:$8 sps:$4 sm:$0xff]  }
  0x48   :  { %v1016_v43 = vld [vmem:[#allocation8 + $0x150] ss:$8 sps:$4 sm:$0xff]   ;;  %v1021_v44 = vld [vmem:[#allocation8 + $0x64] ss:$8 sps:$4 sm:$0xff]   ;;  %v1019_v46 = vld [vmem:[#allocation8 + $0x60] ss:$8 sps:$4 sm:$0xff]  }
  0x49   :  { %200 = vmatpush1.bf16.msra.mxu0 %v981_v16  ;;  %v1024_v45 = vld [vmem:[#allocation8 + $0x164] ss:$8 sps:$4 sm:$0xff]   ;;  %v1022_v47 = vld [vmem:[#allocation8 + $0x160] ss:$8 sps:$4 sm:$0xff]   ;;  %v1027_v48 = vld [vmem:[#allocation8 + $0x74] ss:$8 sps:$4 sm:$0xff]  }
  0x4a   :  { %241 = vmatpush1.bf16.msra.mxu1 %v982_v17  ;;  %728 = vmatprep.subr.bf16.mxu0 %v988_v20  ;;  %v1030_v49 = vld [vmem:[#allocation8 + $0x174] ss:$8 sps:$4 sm:$0xff]   ;;  %v1025_v50 = vld [vmem:[#allocation8 + $0x70] ss:$8 sps:$4 sm:$0xff]   ;;  %v1033_v52 = vld [vmem:[#allocation8 + $0x84] ss:$8 sps:$4 sm:$0xff]   ;;  %v89_v20 = vlaneseq }
  0x4b   :  { %687 = vmatprep.subr.bf16.mxu1 %v985_v19  ;;  %v1028_v51 = vld [vmem:[#allocation8 + $0x170] ss:$8 sps:$4 sm:$0xff]   ;;  %v1036_v53 = vld [vmem:[#allocation8 + $0x184] ss:$8 sps:$4 sm:$0xff]   ;;  %v1031_v54 = vld [vmem:[#allocation8 + $0x80] ss:$8 sps:$4 sm:$0xff]  }
  0x4c   :  { %876 = vmatmul.mubr.msk.bf16.vlgmr.msra.gmra.mrb[0].mxu0 %vm189_vm0, %v70_v21  ;;  %v1034_v55 = vld [vmem:[#allocation8 + $0x180] ss:$8 sps:$4 sm:$0xff]   ;;  %v1039_v56 = vld [vmem:[#allocation8 + $0x94] ss:$8 sps:$4 sm:$0xff]   ;;  %v1037_v58 = vld [vmem:[#allocation8 + $0x90] ss:$8 sps:$4 sm:$0xff]  }
  0x4d   :  { %877 = vmatmul.mubr.msk.bf16.vlgmr.msra.gmra.mrb[0].mxu1 %vm189_vm0, %v70_v21  ;;  %729 = vmatpush1.bf16.msra.mxu0 %v986_v23  ;;  %v1042_v57 = vld [vmem:[#allocation8 + $0x194] ss:$8 sps:$4 sm:$0xff]   ;;  %v1040_v59 = vld [vmem:[#allocation8 + $0x190] ss:$8 sps:$4 sm:$0xff]   ;;  %v1045_v60 = vld [vmem:[#allocation8 + $0xa4] ss:$8 sps:$4 sm:$0xff]  }
  0x4e   :  { %688 = vmatpush1.bf16.msra.mxu1 %v983_v22  ;;  %730 = vmatprep.subr.bf16.mxu0 %v994_v25  ;;  %v1048_v61 = vld [vmem:[#allocation8 + $0x1a4] ss:$8 sps:$4 sm:$0xff]   ;;  %v1043_v62 = vld [vmem:[#allocation8 + $0xa0] ss:$8 sps:$4 sm:$0xff]   ;;  %v1051_v0 = vld [vmem:[#allocation8 + $0xb4] ss:$8 sps:$4 sm:$0xff]  }
  0x4f   :  { %689 = vmatprep.subr.bf16.mxu1 %v991_v24  ;;  %v1046_v63 = vld [vmem:[#allocation8 + $0x1a0] ss:$8 sps:$4 sm:$0xff]   ;;  %v1054_v1 = vld [vmem:[#allocation8 + $0x1b4] ss:$8 sps:$4 sm:$0xff]   ;;  %v1049_v2 = vld [vmem:[#allocation8 + $0xb0] ss:$8 sps:$4 sm:$0xff]  }
  0x50   :  { %v1052_v3 = vld [vmem:[#allocation8 + $0x1b0] ss:$8 sps:$4 sm:$0xff]   ;;  %v1057_v4 = vld [vmem:[#allocation8 + $0xc4] ss:$8 sps:$4 sm:$0xff]   ;;  %v1055_v6 = vld [vmem:[#allocation8 + $0xc0] ss:$8 sps:$4 sm:$0xff]  }
  0x51   :  { %731 = vmatpush1.bf16.msra.mxu0 %v992_v27  ;;  %v1060_v5 = vld [vmem:[#allocation8 + $0x1c4] ss:$8 sps:$4 sm:$0xff]   ;;  %v1058_v7 = vld [vmem:[#allocation8 + $0x1c0] ss:$8 sps:$4 sm:$0xff]   ;;  %v1063_v8 = vld [vmem:[#allocation8 + $0xd4] ss:$8 sps:$4 sm:$0xff]  }
  0x52   :  { %690 = vmatpush1.bf16.msra.mxu1 %v989_v26  ;;  %732 = vmatprep.subr.bf16.mxu0 %v1000_v29  ;;  %v1066_v9 = vld [vmem:[#allocation8 + $0x1d4] ss:$8 sps:$4 sm:$0xff]   ;;  %v1061_v10 = vld [vmem:[#allocation8 + $0xd0] ss:$8 sps:$4 sm:$0xff]   ;;  %v1069_v12 = vld [vmem:[#allocation8 + $0xe4] ss:$8 sps:$4 sm:$0xff]  }
  0x53   :  { %691 = vmatprep.subr.bf16.mxu1 %v997_v28  ;;  %v1064_v11 = vld [vmem:[#allocation8 + $0x1d0] ss:$8 sps:$4 sm:$0xff]   ;;  %v1072_v13 = vld [vmem:[#allocation8 + $0x1e4] ss:$8 sps:$4 sm:$0xff]   ;;  %v1067_v14 = vld [vmem:[#allocation8 + $0xe0] ss:$8 sps:$4 sm:$0xff]  }
  0x54   :  { %v1070_v15 = vld [vmem:[#allocation8 + $0x1e0] ss:$8 sps:$4 sm:$0xff]   ;;  %v1073_v16 = vld [vmem:[#allocation8 + $0xf0] ss:$8 sps:$4 sm:$0xff]   ;;  %v1075_v17 = vld [vmem:[#allocation8 + $0xf4] ss:$8 sps:$4 sm:$0xff]  }
  0x55   :  { %733 = vmatpush1.bf16.msra.mxu0 %v998_v31  ;;  %v1076_v18 = vld [vmem:[#allocation8 + $0x1f0] ss:$8 sps:$4 sm:$0xff]   ;;  %v1078_v19 = vld [vmem:[#allocation8 + $0x1f4] ss:$8 sps:$4 sm:$0xff]   ;;  %v90_v21 = vshrl.u32 %v89_v20, 7 }
  0x56   :  { %692 = vmatpush1.bf16.msra.mxu1 %v995_v30  ;;  %734 = vmatprep.subr.bf16.mxu0 %v1006_v33  ;;  %v87_v24 = vld [vmem:[%s1295_s2] sm:$0xf] }
  0x57   :  { %693 = vmatprep.subr.bf16.mxu1 %v1003_v32  ;;  %v1267_v22 = vsub.s32 0, %v90_v21  ;;  %v99_v23 = vsub.s32 2, %v90_v21  ;;  %v95_v25 = vsub.s32 1, %v90_v21  ;;  %v103_v26 = vsub.s32 3, %v90_v21 }
  0x59   :  { %735 = vmatpush1.bf16.msra.mxu0 %v1004_v35  ;;  %v92_v27 = vrot.slane %v87_v24, %v1267_v22  ;;  %v100_v28 = vrot.slane %v87_v24, %v99_v23  ;;  %v96_v29 = vrot.slane %v87_v24, %v95_v25  ;;  %v104_v30 = vrot.slane %v87_v24, %v103_v26 }
  0x5a   :  { %694 = vmatpush1.bf16.msra.mxu1 %v1001_v34  ;;  %736 = vmatprep.subr.bf16.mxu0 %v1012_v37 }
  0x5b   :  { %695 = vmatprep.subr.bf16.mxu1 %v1009_v36 }
  0x5d   :  { %737 = vmatpush1.bf16.msra.mxu0 %v1010_v39 }
  0x5e   :  { %696 = vmatpush1.bf16.msra.mxu1 %v1007_v38  ;;  %738 = vmatprep.subr.bf16.mxu0 %v1018_v41 }
  0x5f   :  { %697 = vmatprep.subr.bf16.mxu1 %v1015_v40 }
  0x61   :  { %739 = vmatpush1.bf16.msra.mxu0 %v1016_v43 }
  0x62   :  { %698 = vmatpush1.bf16.msra.mxu1 %v1013_v42  ;;  %740 = vmatprep.subr.bf16.mxu0 %v1024_v45 }
  0x63   :  { %699 = vmatprep.subr.bf16.mxu1 %v1021_v44 }
  0x65   :  { %741 = vmatpush1.bf16.msra.mxu0 %v1022_v47 }
  0x66   :  { %700 = vmatpush1.bf16.msra.mxu1 %v1019_v46  ;;  %742 = vmatprep.subr.bf16.mxu0 %v1030_v49 }
  0x67   :  { %701 = vmatprep.subr.bf16.mxu1 %v1027_v48 }
  0x69   :  { %743 = vmatpush1.bf16.msra.mxu0 %v1028_v51 }
  0x6a   :  { %702 = vmatpush1.bf16.msra.mxu1 %v1025_v50  ;;  %744 = vmatprep.subr.bf16.mxu0 %v1036_v53 }
  0x6b   :  { %703 = vmatprep.subr.bf16.mxu1 %v1033_v52 }
  0x6d   :  { %745 = vmatpush1.bf16.msra.mxu0 %v1034_v55  ;;  %v775_v55 = vld [vmem:[%s1298_s5] sm:$0xff] }
  0x6e   :  { %704 = vmatpush1.bf16.msra.mxu1 %v1031_v54  ;;  %746 = vmatprep.subr.bf16.mxu0 %v1042_v57  ;;  %v825_v57 = vld [vmem:[#allocation2] sm:$0x1] }
  0x6f   :  { %705 = vmatprep.subr.bf16.mxu1 %v1039_v56  ;;  %v943_v56 = vcombine.high %v775_v55, %v775_v55  ;;  %828 = vperm.xlu0 %958, %v825_v57  }
  0x71   :  { %747 = vmatpush1.bf16.msra.mxu0 %v1040_v59 }
  0x72   :  { %706 = vmatpush1.bf16.msra.mxu1 %v1037_v58  ;;  %748 = vmatprep.subr.bf16.mxu0 %v1048_v61  ;;  %v355_v58 = vld [vmem:[%s1297_s4] sm:$0x3]  ;;  %s1187_s4 = smov [#allocation9]  }
  0x73   :  { %707 = vmatprep.subr.bf16.mxu1 %v1045_v60  ;;  %v360_v59 = vrot.slane %v355_v58, %v1267_v22  ;;  %v364_v60 = vrot.slane %v355_v58, %v95_v25  ;;  %s850_s5 = sshll.u32 %s1187_s4, 4  ;;  %s851_s5 = int_to_ptr.vmem [resolvable:$true] %s850_s5 }
  0x74   :  { %s1151_s20 = scalar_lea.vmem %s851_s5, 16  ;;  %s1155_s21 = scalar_lea.vmem %s851_s5, 32 }
  0x75   :  { %749 = vmatpush1.bf16.msra.mxu0 %v1046_v63  ;;  %p1152_p10 = scmp.ne.s32.totalorder %s851_s5, %s1151_s20  ;;  %p1156_p11 = scmp.lt.s32.totalorder %s851_s5, %s851_s5 }
  0x76   :  { %708 = vmatpush1.bf16.msra.mxu1 %v1043_v62  ;;  %750 = vmatprep.subr.bf16.mxu0 %v1054_v1  ;;  %p1157_p12 = scmp.lt.s32.totalorder %s1155_s21, %s1151_s20 }
  0x77   :  { %709 = vmatprep.subr.bf16.mxu1 %v1051_v0 }
  0x78   :  { %p1158_p13 = por %p1157_p12, %p1156_p11 }
  0x79   :  { %751 = vmatpush1.bf16.msra.mxu0 %v1052_v3 }
  0x7a   :  { %710 = vmatpush1.bf16.msra.mxu1 %v1049_v2  ;;  %752 = vmatprep.subr.bf16.mxu0 %v1060_v5  ;;  %p1159_p0 = pnand %p1158_p13, %p1152_p10 }
  0x7b   :  { %711 = vmatprep.subr.bf16.mxu1 %v1057_v4 }
  0x7d   :  { %753 = vmatpush1.bf16.msra.mxu0 %v1058_v7 }
  0x7e   :  { %712 = vmatpush1.bf16.msra.mxu1 %v1055_v6  ;;  %754 = vmatprep.subr.bf16.mxu0 %v1066_v9 }
  0x7f   :  { %713 = vmatprep.subr.bf16.mxu1 %v1063_v8 }
  0x81   :  { %755 = vmatpush1.bf16.msra.mxu0 %v1064_v11 }
  0x82   :  { %714 = vmatpush1.bf16.msra.mxu1 %v1061_v10  ;;  %756 = vmatprep.subr.bf16.mxu0 %v1072_v13 }
  0x83   :  { %715 = vmatprep.subr.bf16.mxu1 %v1069_v12 }
  0x85   :  { %757 = vmatpush1.bf16.msra.mxu0 %v1070_v15  ;;  %v942_v15 = vcombine.low %v775_v55, %v775_v55 }
  0x86   :  { %716 = vmatpush1.bf16.msra.mxu1 %v1067_v14  ;;  %758 = vmatprep.subr.bf16.mxu0 %v1078_v19 }
  0x87   :  { %717 = vmatprep.subr.bf16.mxu1 %v1075_v17 }
  0x89   :  { %759 = vmatpush1.bf16.msra.mxu0 %v1076_v18 }
  0x8a   :  { %718 = vmatpush1.bf16.msra.mxu1 %v1073_v16 }
  0xee   :  { %v829_v16 = vpop.permute.xlu0 %828 }
  0xef   :  { %v834_v17 = vrot.slane %v829_v16, %v1267_v22 }
 0x11f   :  { %v227_v31 = vpop.f32.mrb[0].mxu0 }
 0x120   :  { %v268_v32 = vpop.f32.mrb[0].mxu1  ;;  %v228_v33 = vadd.f32 %v227_v31, %v92_v27  ;;  %v229_v35 = vpop.f32.mrb[1].mxu0 }
 0x121   :  { %v269_v34 = vadd.f32 %v268_v32, %v100_v28  ;;  %v270_v36 = vpop.f32.mrb[1].mxu1  ;;  %v230_v37 = vadd.f32 %v229_v35, %v96_v29  ;;  %v231_v39 = vpop.f32.mrb[2].mxu0 }
 0x122   :  { %v271_v38 = vadd.f32 %v270_v36, %v104_v30  ;;  %v272_v40 = vpop.f32.mrb[2].mxu1  ;;  %vm275_vm1 = vcmp.gt.f32.partialorder %v228_v33, 0.0  ;;  %v279_v41 = vmul.f32 0.2, %v228_v33  ;;  %v232_v47 = vpop.f32.mrb[3].mxu0 }
 0x123   :  { %vm277_vm2 = vcmp.gt.f32.partialorder %v269_v34, 0.0  ;;  %v281_v42 = vmul.f32 0.2, %v269_v34  ;;  %vm276_vm3 = vcmp.gt.f32.partialorder %v230_v37, 0.0  ;;  %v280_v43 = vmul.f32 0.2, %v230_v37 }
 0x124   :  { %vm278_vm4 = vcmp.gt.f32.partialorder %v271_v38, 0.0  ;;  %v282_v44 = vmul.f32 0.2, %v271_v38  ;;  %v283_v45 = vsel %vm275_vm1, %v228_v33, %v279_v41  ;;  %v273_v48 = vpop.f32.mrb[3].mxu1 }
 0x125   :  { %v285_v46 = vsel %vm277_vm2, %v269_v34, %v281_v42  ;;  %v284_v49 = vsel %vm276_vm3, %v230_v37, %v280_v43  ;;  %v287_v53 = vpack.c.bf16 %v283_v45, %v283_v45 }
 0x126   :  { %v286_v50 = vsel %vm278_vm4, %v271_v38, %v282_v44  ;;  %v288_v51 = vpack.c.bf16 %v284_v49, %v284_v49  ;;  %v289_v54 = vpack.c.bf16 %v285_v46, %v285_v46 }
 0x127   :  { %v290_v52 = vpack.c.bf16 %v286_v50, %v286_v50 }
 0x128   :  { %719 = vmatprep.mubr.bf16.mxu1 %v288_v51 }
 0x129   :  { %760 = vmatprep.mubr.bf16.mxu0 %v290_v52  ;;  %720 = vmatmul.mubr.bf16.vlgmr.msra.gmra.mrb[4].mxu1 %v287_v53 }
 0x12a   :  { %761 = vmatmul.mubr.bf16.vlgmr.msra.gmra.mrb[4].mxu0 %v289_v54  ;;  %817 = vmatprep.mubr.bf16.mxu1 %v943_v56 }
 0x1fc   :  { %v721_v61 = vpop.f32.mrb[4].mxu1 }
 0x1fd   :  { %v762_v62 = vpop.f32.mrb[4].mxu0  ;;  %v722_v63 = vadd.f32 %v721_v61, %v360_v59  ;;  %v723_v0 = vpop.f32.mrb[5].mxu1 }
 0x1fe   :  { %v764_v1 = vpop.f32.mrb[5].mxu0  ;;  %v724_v2 = vadd.f32 %v723_v0, %v364_v60  ;;  %v725_v3 = vpop.f32.mrb[6].mxu1 }
 0x1ff   :  { %v766_v4 = vpop.f32.mrb[6].mxu0  ;;  %v763_v5 = vadd.f32 %v762_v62, %v722_v63  ;;  %v726_v6 = vpop.f32.mrb[7].mxu1 }
 0x200   :  { %v767_v7 = vpop.f32.mrb[7].mxu0  ;;  %v765_v8 = vadd.f32 %v764_v1, %v724_v2 }
 0x201   :  { %vm769_vm5 = vcmp.gt.f32.partialorder %v763_v5, 0.0  ;;  %v771_v9 = vmul.f32 0.2, %v763_v5 }
 0x202   :  { %vm770_vm6 = vcmp.gt.f32.partialorder %v765_v8, 0.0  ;;  %v772_v10 = vmul.f32 0.2, %v765_v8 }
 0x203   :  { %v773_v11 = vsel %vm769_vm5, %v763_v5, %v771_v9 }
 0x204   :  { %v774_v12 = vsel %vm770_vm6, %v765_v8, %v772_v10  ;;  %v776_v14 = vpack.c.bf16 %v773_v11, %v773_v11 }
 0x205   :  { %v777_v13 = vpack.c.bf16 %v774_v12, %v774_v12 }
 0x207   :  { %785 = vmatprep.subr.bf16.mxu1 %v777_v13 }
 0x208   :  { %786 = vmatpush1.bf16.xpose.msra.mxu1 %v776_v14 }
 0x20f   :  { %818 = vmatmul.mubr.bf16.vlgmr.msra.gmra.mrb[8].mxu1 %v942_v15 }
 0x2e2   :  { %v819_v18 = vpop.f32.mrb[8].mxu1 }
 0x2e3   :  { %v835_v19 = vadd.f32 %v834_v17, %v819_v18  ;;  %v821_v20 = vpop.f32.mrb[9].mxu1 }
 0x2e4   :  { %v822_v21 = vpop.f32.mrb[10].mxu1 }
 0x2e5   :  { %v944_v23 = vmul.f32 -1.442695, %v835_v19  ;;  %v823_v24 = vpop.f32.mrb[11].mxu1 }
 0x2e7   :  { %1081 = vpow2.f32 %v944_v23 }
 0x2f1   :  { %v1082_v25 = vpop.eup %1081 }
 0x2f2   :  { %v839_v26 = vadd.f32 1.0, %v1082_v25 }
 0x2f4   :  { %1083 = vrcp.f32 %v839_v26 }
 0x2fe   :  { %v1084_v27 = vpop.eup %1083 }
 0x2ff   :  { %843 = vst.msk [vmem:[#allocation9] sm:$0x1] %vm842_vm7, %v1084_v27 }
 0x300   :  { %1162 = shalt.err (!%p1159_p0)
}
 0x301   :  { %s1163_s24 = scalar_lea.hbm %s1300_s7, 16 }
 0x302   :  { %p1164_p1 = scmp.ne.s32.totalorder %s1300_s7, %s1163_s24  ;;  %p1167_p2 = scmp.lt.u32.totalorder %s1163_s24, %s1300_s7 }
 0x304   :  { %p1169_p3 = pnand %p1167_p2, %p1164_p1 }
 0x306   :  { %1172 = shalt.err (!%p1169_p3)
}
 0x307   :  { %853 = dma.vmem_to_hbm [thread:$0]  %s851_s5, 16, %s1300_s7, [#allocation5]  }
 0x308   :  { %1177 = dma.done.wait [#allocation5], 16  }
 0x309   :  { %1178 = vsyncadd [#allocation5], 4294967280 }
 0x30a   :  { %857 = vsyncpa [#allocation4], 1 }
 0x30b   :  { %858 = vsyncpa [#allocation7], 1 }
 0x30c   :  { %859 = vsyncpa [#allocation5], 1 }

</bundles_post_ra>
